<compile_context>
chip_gen: v5e
topology: v5e:2x2
jax: 0.10.0
libtpu: 0.0.40
codegen_flags: <defaults>
</compile_context>

<pallas_src>
import functools

import jax
import jax.numpy as jnp
from jax import lax
from jax.experimental import pallas as pl
from jax.experimental.pallas import tpu as pltpu

_LANES = 128


def _focal_smooth_kernel(logits_ref, labels_ref, out_ref, *,
                         num_classes, gamma, lb_pos, lb_neg):
    # logits_ref: (1, C, s_tile, 128), labels_ref: (1, s_tile, 128)
    x = logits_ref[0].astype(jnp.float32)          # (C, s_tile, 128)
    lab = labels_ref[0]                            # (s_tile, 128) int32

    # log_softmax over the class axis (axis 0 == non-tiled -> cheap VALU reduce)
    m = jnp.max(x, axis=0, keepdims=True)          # (1, s_tile, 128)
    shifted = x - m
    sumexp = jnp.sum(jnp.exp(shifted), axis=0, keepdims=True)
    ls = shifted - jnp.log(sumexp)                 # (C, s_tile, 128)

    sum_ls = jnp.sum(ls, axis=0)                   # (s_tile, 128)

    # gather the target-class log-prob via a one-hot compare along the class axis
    cls = lax.broadcasted_iota(jnp.int32, ls.shape, 0)
    onehot = (cls == lab[None]).astype(jnp.float32)
    ls_t = jnp.sum(onehot * ls, axis=0)            # (s_tile, 128)

    p_t = jnp.exp(ls_t)
    one_m_pt = 1.0 - p_t
    g = float(gamma)
    if g == 1.0:
        diff_t = one_m_pt
    elif g.is_integer():
        diff_t = lax.integer_pow(one_m_pt, int(g))
    else:
        diff_t = jnp.power(one_m_pt, g)

    # per-pixel focal + label-smoothing loss
    loss = -(lb_neg * (sum_ls - ls_t) + lb_pos * diff_t * ls_t)   # (s_tile, 128)

    # mask out padded pixels and ignore_index pixels (both encoded as label < 0)
    loss = jnp.where(lab >= 0, loss, 0.0)

    # lane-dense per-block partial sum, written into row 0 of an (8,128) block
    psum = jnp.sum(loss, axis=0, keepdims=True)    # (1, 128)
    row = lax.broadcasted_iota(jnp.int32, (8, _LANES), 0)
    partial8 = jnp.where(row == 0, psum, 0.0)      # (8, 128)
    out_ref[...] = partial8[None, None]            # (1, 1, 8, 128)


def focal_loss_with_smoothing(logits, label, *, num_classes, gamma=1,
                              lb_smooth=0.1, ignore_index=None,
                              size_average=True, alpha=None,
                              pixels_per_tile=32768):
    """logits: (B, C, H, W); label: (B, H, W) int. Returns scalar mean loss."""
    del size_average, alpha  # unused by the PyTorch forward (always .mean(); alpha unused)
    B, C, H, W = logits.shape
    assert C == num_classes
    HW = H * W

    # ---- choose tiling: pixels on (sublane, lane), class on a leading axis ----
    S_total = -(-HW // _LANES)                         # ceil(HW / 128)
    s_target = max(8, (pixels_per_tile // _LANES) // 8 * 8)
    s_tile = min(s_target, S_total)
    if S_total % s_tile != 0 and S_total > 8:
        # prefer a multiple-of-8 divisor of S_total to avoid any pixel padding
        for cand in range(s_tile - s_tile % 8, 7, -8):
            if S_total % cand == 0:
                s_tile = cand
                break
    S_padded = -(-S_total // s_tile) * s_tile
    HW_padded = S_padded * _LANES
    num_j = S_padded // s_tile

    # ---- views (no transpose; reshapes of contiguous trailing dims are free) ----
    logits3 = logits.reshape(B, C, HW)                 # keep input dtype (bf16 ok)
    labels2 = label.reshape(B, HW).astype(jnp.int32)
    if ignore_index is not None:
        labels2 = jnp.where(labels2 == ignore_index, -1, labels2)
    if HW_padded != HW:
        # TODO(synk): this pad is an extra HBM pass; a masked in-kernel tail tile
        # would avoid it for shapes whose pixel count is not a multiple of 128.
        logits3 = jnp.pad(logits3, ((0, 0), (0, 0), (0, HW_padded - HW)))
        labels2 = jnp.pad(labels2, ((0, 0), (0, HW_padded - HW)), constant_values=-1)
    logits4 = logits3.reshape(B, C, S_padded, _LANES)
    labels3 = labels2.reshape(B, S_padded, _LANES)

    lb_pos = 1.0 - lb_smooth
    lb_neg = lb_smooth / (num_classes - 1)

    kernel = functools.partial(
        _focal_smooth_kernel,
        num_classes=C, gamma=float(gamma),
        lb_pos=float(lb_pos), lb_neg=float(lb_neg))

    # ---- VMEM budget (safe on v7x's 64 MiB as well as v5e/v6e) ----
    itemsize = jnp.dtype(logits.dtype).itemsize
    tile_bytes = (2 * C * s_tile * _LANES * itemsize   # logits, double-buffered
                  + 2 * s_tile * _LANES * 4            # labels, double-buffered
                  + 2 * 8 * _LANES * 4)                # output partials
    vmem_limit = int(min(48 * 1024 * 1024, max(32 * 1024 * 1024, 4 * tile_bytes)))

    partials = pl.pallas_call(
        kernel,
        out_shape=jax.ShapeDtypeStruct((B, num_j, 8, _LANES), jnp.float32),
        grid_spec=pltpu.PrefetchScalarGridSpec(
            num_scalar_prefetch=0,
            grid=(B, num_j),
            in_specs=[
                pl.BlockSpec((1, C, s_tile, _LANES), lambda b, j: (b, 0, j, 0)),
                pl.BlockSpec((1, s_tile, _LANES), lambda b, j: (b, j, 0)),
            ],
            out_specs=pl.BlockSpec((1, 1, 8, _LANES), lambda b, j: (b, j, 0, 0)),
        ),
        compiler_params=pltpu.CompilerParams(
            dimension_semantics=("parallel", "parallel"),
            vmem_limit_bytes=vmem_limit),
    )(logits4, labels3)

    # final reduction + single divide (torch divides by the full pixel count,
    # including ignore_index pixels; padded pixels are excluded).
    total = jnp.sum(partials)
    return total / jnp.float32(B * HW)


def _reference_loss(logits, label, *, num_classes, gamma=1, lb_smooth=0.1,
                    ignore_index=None):
    """Pure-JAX reference mirroring the PyTorch forward."""
    logits = logits.astype(jnp.float32)
    lab = label
    if ignore_index is not None:
        ignore = lab == ignore_index
        lab = jnp.where(ignore, 0, lab)
    p = jax.nn.softmax(logits, axis=1)
    ls = jax.nn.log_softmax(logits, axis=1)
    onehot = jax.nn.one_hot(lab, num_classes, axis=1, dtype=jnp.float32)
    pt = onehot * p
    diff = (1.0 - pt) ** gamma
    lb_pos = 1.0 - lb_smooth
    lb_neg = lb_smooth / (num_classes - 1)
    lb_one_hot = lb_neg + onehot * (lb_pos - lb_neg)
    loss = -jnp.sum(diff * ls * lb_one_hot, axis=1)
    if ignore_index is not None:
        loss = jnp.where(ignore, 0.0, loss)
    return loss.mean()


if __name__ == "__main__":
    B, C, H, W = 2, 4, 16, 16
    key = jax.random.PRNGKey(0)
    k_logits, k_label = jax.random.split(key)
    logits = jax.random.normal(k_logits, (B, C, H, W), dtype=jnp.float32)
    label = jax.random.randint(k_label, (B, H, W), 0, C, dtype=jnp.int32)

    loss = focal_loss_with_smoothing(logits, label, num_classes=C,
                                     gamma=1, lb_smooth=0.1)
    loss = jax.block_until_ready(loss)

    ref = _reference_loss(logits, label, num_classes=C, gamma=1, lb_smooth=0.1)
    assert jnp.allclose(loss, ref, rtol=1e-5, atol=1e-5), (loss, ref)

    print("KERNEL_OK")
</pallas_src>

<mosaic_0001>
module attributes {stable_mosaic.version = 11 : i64} {
  func.func @_focal_smooth_kernel(%arg0: i32, %arg1: i32, %arg2: memref<1x4x2x128xf32, #tpu.memory_space<vmem>>, %arg3: memref<1x2x128xi32, #tpu.memory_space<vmem>>, %arg4: memref<1x1x8x128xf32, #tpu.memory_space<vmem>>) attributes {dimension_semantics = [#tpu.dimension_semantics<parallel>, #tpu.dimension_semantics<parallel>], iteration_bounds = array<i64: 2, 1>, scalar_prefetch = 0 : i64, scratch_operands = 0 : i64, tpu.core_type = #tpu.core_type<tc>, window_params = [{transform_indices = @transform_0, window_bounds = array<i64: 1, 4, 2, 128>}, {transform_indices = @transform_1, window_bounds = array<i64: 1, 2, 128>}, {transform_indices = @transform_2, window_bounds = array<i64: 1, 1, 8, 128>}]} {
    %c0 = arith.constant 0 : index
    %c0_0 = arith.constant 0 : index
    %c0_1 = arith.constant 0 : index
    %c0_2 = arith.constant 0 : index
    %0 = vector.load %arg2[%c0, %c0_0, %c0_1, %c0_2] : memref<1x4x2x128xf32, #tpu.memory_space<vmem>>, vector<1x4x2x128xf32>
    %1 = vector.shape_cast %0 : vector<1x4x2x128xf32> to vector<4x2x128xf32>
    %c0_3 = arith.constant 0 : index
    %c0_4 = arith.constant 0 : index
    %c0_5 = arith.constant 0 : index
    %2 = vector.load %arg3[%c0_3, %c0_4, %c0_5] : memref<1x2x128xi32, #tpu.memory_space<vmem>>, vector<1x2x128xi32>
    %3 = vector.shape_cast %2 : vector<1x2x128xi32> to vector<2x128xi32>
    %cst = arith.constant dense<0xFF800000> : vector<2x128xf32>
    %4 = vector.multi_reduction <maximumf>, %1, %cst [0] : vector<4x2x128xf32> to vector<2x128xf32>
    %5 = vector.shape_cast %4 : vector<2x128xf32> to vector<1x2x128xf32>
    %6 = vector.broadcast %5 : vector<1x2x128xf32> to vector<4x2x128xf32>
    %7 = arith.subf %1, %6 : vector<4x2x128xf32>
    %8 = math.exp %7 : vector<4x2x128xf32>
    %cst_6 = arith.constant dense<0.000000e+00> : vector<2x128xf32>
    %9 = vector.multi_reduction <add>, %8, %cst_6 [0] : vector<4x2x128xf32> to vector<2x128xf32>
    %10 = vector.shape_cast %9 : vector<2x128xf32> to vector<1x2x128xf32>
    %11 = math.log %10 : vector<1x2x128xf32>
    %12 = vector.broadcast %11 : vector<1x2x128xf32> to vector<4x2x128xf32>
    %13 = arith.subf %7, %12 : vector<4x2x128xf32>
    %cst_7 = arith.constant dense<0.000000e+00> : vector<2x128xf32>
    %14 = vector.multi_reduction <add>, %13, %cst_7 [0] : vector<4x2x128xf32> to vector<2x128xf32>
    %15 = tpu.iota {dimensions = array<i32: 0>} : vector<4x2x128xi32>
    %16 = vector.shape_cast %3 : vector<2x128xi32> to vector<1x2x128xi32>
    %17 = vector.broadcast %16 : vector<1x2x128xi32> to vector<4x2x128xi32>
    %18 = arith.cmpi eq, %15, %17 : vector<4x2x128xi32>
    %19 = arith.extui %18 : vector<4x2x128xi1> to vector<4x2x128xi32>
    %20 = arith.sitofp %19 : vector<4x2x128xi32> to vector<4x2x128xf32>
    %21 = arith.mulf %20, %13 : vector<4x2x128xf32>
    %cst_8 = arith.constant dense<0.000000e+00> : vector<2x128xf32>
    %22 = vector.multi_reduction <add>, %21, %cst_8 [0] : vector<4x2x128xf32> to vector<2x128xf32>
    %23 = math.exp %22 : vector<2x128xf32>
    %cst_9 = arith.constant 1.000000e+00 : f32
    %24 = vector.broadcast %cst_9 : f32 to vector<2x128xf32>
    %25 = arith.subf %24, %23 : vector<2x128xf32>
    %26 = arith.subf %14, %22 : vector<2x128xf32>
    %cst_10 = arith.constant 0.0333333351 : f32
    %27 = vector.broadcast %cst_10 : f32 to vector<2x128xf32>
    %28 = arith.mulf %27, %26 : vector<2x128xf32>
    %cst_11 = arith.constant 0.899999976 : f32
    %29 = vector.broadcast %cst_11 : f32 to vector<2x128xf32>
    %30 = arith.mulf %29, %25 : vector<2x128xf32>
    %31 = arith.mulf %30, %22 : vector<2x128xf32>
    %32 = arith.addf %28, %31 : vector<2x128xf32>
    %cst_12 = arith.constant 0.000000e+00 : f32
    %33 = vector.broadcast %cst_12 : f32 to vector<2x128xf32>
    %34 = arith.subf %33, %32 : vector<2x128xf32>
    %c0_i32 = arith.constant 0 : i32
    %35 = vector.broadcast %c0_i32 : i32 to vector<2x128xi32>
    %36 = arith.cmpi sge, %3, %35 : vector<2x128xi32>
    %cst_13 = arith.constant 0.000000e+00 : f32
    %37 = vector.broadcast %cst_13 : f32 to vector<2x128xf32>
    %38 = arith.select %36, %34, %37 : vector<2x128xi1>, vector<2x128xf32>
    %cst_14 = arith.constant dense<0.000000e+00> : vector<128xf32>
    %39 = vector.multi_reduction <add>, %38, %cst_14 [0] : vector<2x128xf32> to vector<128xf32>
    %40 = vector.shape_cast %39 : vector<128xf32> to vector<1x128xf32>
    %41 = tpu.iota {dimensions = array<i32: 0>} : vector<8x128xi32>
    %c0_i32_15 = arith.constant 0 : i32
    %42 = vector.broadcast %c0_i32_15 : i32 to vector<8x128xi32>
    %43 = arith.cmpi eq, %41, %42 : vector<8x128xi32>
    %cst_16 = arith.constant 0.000000e+00 : f32
    %44 = vector.shape_cast %40 : vector<1x128xf32> to vector<1x128xf32>
    %45 = vector.broadcast %44 : vector<1x128xf32> to vector<8x128xf32>
    %46 = vector.broadcast %cst_16 : f32 to vector<8x128xf32>
    %47 = arith.select %43, %45, %46 : vector<8x128xi1>, vector<8x128xf32>
    %48 = vector.shape_cast %47 : vector<8x128xf32> to vector<1x1x8x128xf32>
    %c0_17 = arith.constant 0 : index
    %c0_18 = arith.constant 0 : index
    %c0_19 = arith.constant 0 : index
    %c0_20 = arith.constant 0 : index
    %49 = vector.load %arg4[%c0_17, %c0_18, %c0_19, %c0_20] : memref<1x1x8x128xf32, #tpu.memory_space<vmem>>, vector<1x1x8x128xf32>
    tpu.vector_store %arg4[%c0_17, %c0_18, %c0_19, %c0_20], %48 {strides = array<i32>} : memref<1x1x8x128xf32, #tpu.memory_space<vmem>>, vector<1x1x8x128xf32>,
    return
  }
  func.func @transform_0(%arg0: i32, %arg1: i32) -> (i32, i32, i32, i32) {
    %c0_i32 = arith.constant 0 : i32
    %c0_i32_0 = arith.constant 0 : i32
    %c0_i32_1 = arith.constant 0 : i32
    return %arg0, %c0_i32, %arg1, %c0_i32_0 : i32, i32, i32, i32
  }
  func.func @transform_1(%arg0: i32, %arg1: i32) -> (i32, i32, i32) {
    %c0_i32 = arith.constant 0 : i32
    %c0_i32_0 = arith.constant 0 : i32
    return %arg0, %arg1, %c0_i32 : i32, i32, i32
  }
  func.func @transform_2(%arg0: i32, %arg1: i32) -> (i32, i32, i32, i32) {
    %c0_i32 = arith.constant 0 : i32
    %c0_i32_0 = arith.constant 0 : i32
    %c0_i32_1 = arith.constant 0 : i32
    return %arg0, %arg1, %c0_i32, %c0_i32_0 : i32, i32, i32, i32
  }
}

</mosaic_0001>

<bundles_post_ra>
// kernel: tpu_custom_call.1
= control target key start
LH: loop header
LB: loop body
LE: loop exit
PB: predicated region body
PF: predicated region fallthrough
CT: control target
= control target key end

     0   :  { %7 = vsyncpa [#allocation3], 0  ;;  %s868_s0 = inlined_call_operand.hbm [shape: f32[2,4,2,128], index: 0, kind: input, shape index: {}]   ;;  %s869_s1 = inlined_call_operand.hbm [shape: s32[2,2,128], index: 1, kind: input, shape index: {}]   ;;  %s870_s2 = inlined_call_operand.hbm [shape: f32[2,1,8,128], index: 2, kind: output, shape index: {}]  }
   0x1   :  { %9 = vsyncpa [#allocation3 + $0x1], 0 }
   0x2   :  { %10 = vsyncpa [#allocation6], 0 }
   0x3   :  { %12 = vsyncpa [#allocation6 + $0x1], 0 }
   0x4   :  { %13 = vsyncpa [#allocation4], 0 }
   0x5   :  { %15 = vsyncpa [#allocation4 + $0x1], 0  ;;  %s706_s9 = smov 0   ;;  %s708_s10 = smov 0  }
   0x6   :  { %s710_s11 = smov 0   ;;  %s712_s12 = smov 0  }
   0x7   :  { %s714_s13 = smov 0   ;;  %s716_s14 = smov 0  }
   0x8 LB: > { %s436_s15 = sadd.s32 4294967295, %s686_s14   ;;  %s437_s16 = sadd.s32 4294967294, %s686_s14   ;;  %s686_s14 = sphi %s716_s14, %s21_s14   ;;  %s682_s13 = sphi %s714_s13, %s880_s13   ;;  %s678_s12 = sphi %s712_s12, %s879_s12   ;;  %s674_s11 = sphi %s710_s11, %s878_s11   ;;  %s670_s10 = sphi %s708_s10, %s877_s10   ;;  %s666_s9 = sphi %s706_s9, %s876_s9  }
   0x9   : > { %s33_s17 = sadd.s32 1, %s682_s13  ;;  %s42_s18 = sadd.s32 1, %s674_s11 }
   0xa   : > { %p35_p0 = scmp.ge.s32.totalorder %s33_s17, 2  ;;  %p49_p1 = scmp.ne.s32.totalorder %s674_s11, %s670_s10 }
   0xb   : > { %p50_p2 = scmp.eq.s32.totalorder %s686_s14, 0  ;;  %p55_p3 = scmp.ne.s32.totalorder %s670_s10, %s666_s9 }
   0xc   : > { %s882_s17 = smov (%p35_p0, %s33_s17), 0  ;;  %p56_p5 = scmp.eq.s32.totalorder %s436_s15, 0 }
   0xd   : > { %p747_p4 = por %p50_p2, %p49_p1  ;;  %s37_s20 = ssub.s32 %s682_s13, %s882_s17 }
   0xe   : > { %p109_p6 = scmp.eq.s32.totalorder %s436_s15, 1  ;;  %p40_p7 = scmp.eq.s32.totalorder %s37_s20, 0 }
   0xf   : > { %p753_p8 = por %p56_p5, %p55_p3  ;;  %p115_p10 = scmp.eq.s32.totalorder %s437_s16, 1 }
  0x10   : > { %p757_p9 = por %p109_p6, %p49_p1  ;;  %p439_p12 = scmp.ge.s32.totalorder %s686_s14, 2 }
  0x11   : > { %s762_s23 = scalar_select %p40_p7, %s674_s11, %s42_s18  }
  0x12   : > { %p764_p11 = por %p115_p10, %p55_p3  ;;  %p475_p13 = scmp.lt.s32.totalorder %s686_s14, 2 }
  0x13   : > { %s135_s25 = sand.u32 1, %s674_s11   ;;  %s457_s27 = sshll.u32 %s682_s13, 3 }
  0x14   : > { %s440_s26 = sshll.u32 %s135_s25, 3  ;;  %s145_s30 = scalar_lea.hbm %s868_s0, %s457_s27 }
  0x15   : > { %s139_s3 = scalar_lea.vmem [#allocation2], %s440_s26  ;;  %s146_s5 = sshll.u32 %s145_s30, 4  ;;  %s147_s5 = int_to_ptr.hbm [resolvable:$true] %s146_s5 }
  0x16   : > { %s148_s4 = sshll.u32 %s139_s3, 4  ;;  %p777_p0 = pnand %p475_p13, %p747_p4  ;;  %s149_s4 = int_to_ptr.vmem [resolvable:$true] %s148_s4 }
  0x17   : > { %p445_p1 = scmp.ge.s32.totalorder %s686_s14, 1  ;;  %s136_s7 = scalar_lea.sflag [#allocation3], %s135_s25 }
  0x18   : > { %s688_s8 = smov 32   ;;  %s689_s15 = smov 2  }
  0x19   : > { %467 = dma.hbm_to_vmem [thread:$0]  (!%p777_p0), %s147_s5, 128, %s149_s4, %s136_s7, %s688_s8, %s688_s8, %s689_s15  }
  0x1a   : > { %p176_p2 = scmp.lt.s32.totalorder %s686_s14, 3  ;;  %s443_s16 = sshll.u32 %s135_s25, 1 }
  0x1b   : > { %s444_s18 = sshll.u32 %s682_s13, 1  ;;  %s162_s27 = scalar_lea.vmem [#allocation5], %s443_s16 }
  0x1c   : > { %p177_p3 = pnand %p445_p1, %p176_p2  ;;  %s167_s19 = scalar_lea.hbm %s869_s1, %s444_s18 }
  0x1d   : > { %s171_s28 = sshll.u32 %s162_s27, 4  ;;  %s169_s29 = sshll.u32 %s167_s19, 4  ;;  %s172_s28 = int_to_ptr.vmem [resolvable:$true] %s171_s28  ;;  %s170_s29 = int_to_ptr.hbm [resolvable:$true] %s169_s29 }
  0x1e   : > { %s159_s30 = scalar_lea.sflag [#allocation6], %s135_s25  ;;  %180 = sbr.rel (%p177_p3) target bundleno = 122 (0x7a), region = 28 }
  0x1f   : > { %470 = dma.hbm_to_vmem [thread:$0]  (!%p777_p0), %s170_s29, 32, %s172_s28, %s159_s30  }
  0x20   : > { %s792_s3 = sand.u32 (!%p177_p3), 1, %s670_s10  }
  0x21   : > { %s446_s4 = sshll.u32 (!%p177_p3), %s792_s3, 3  ;;  %s183_s5 = scalar_lea.sflag (!%p177_p3), [#allocation3], %s792_s3 }
  0x22   : > { %s186_s7 = scalar_lea.vmem (!%p177_p3), [#allocation2], %s446_s4 }
  0x23   : > { %653 = dma.done.wait (%p753_p8), %s183_s5, 128  }
  0x24   : > { %655 = vsyncadd (%p753_p8), %s183_s5, 4294967168  ;;  %s447_s25 = sshll.u32 %s792_s3, 1  ;;  %s193_s6 = scalar_lea.sflag [#allocation6], %s792_s3 }
  0x25   : > { %s804_s8 = scalar_lea.vmem [#allocation5], %s447_s25 }
  0x26   : > { %657 = dma.done.wait (%p753_p8), %s193_s6, 32  }
  0x27   : > { %659 = vsyncadd (%p753_p8), %s193_s6, 4294967264  ;;  %vm228_vm0 = vcmask 1041408   ;;  %v223_v0 = vld [vmem:[%s186_s7] sm:$0x3]  ;;  %v224_v1 = vld [vmem:[%s186_s7 + $0x2] sm:$0x3] }
  0x28   : > { %v225_v2 = vld [vmem:[%s186_s7 + $0x4] sm:$0x3]  ;;  %v226_v3 = vld [vmem:[%s186_s7 + $0x6] sm:$0x3]  ;;  %v229_v4 = vsel %vm228_vm0, %v223_v0, -inf  ;;  %v230_v5 = vsel %vm228_vm0, %v224_v1, -inf }
  0x29   : > { %v231_v6 = vsel %vm228_vm0, %v225_v2, -inf  ;;  %v232_v7 = vsel %vm228_vm0, %v226_v3, -inf  ;;  %v233_v8 = vmax.f32 %v229_v4, %v230_v5  ;;  %v227_v30 = vld [vmem:[%s804_s8] sm:$0x3]  ;;  %v690_v33 = vmov 0.0   ;;  %s454_s21 = sshll.u32 %s678_s12, 3 }
  0x2a   : > { %v234_v9 = vmax.f32 %v231_v6, %v232_v7  ;;  %vm268_vm1 = vcmp.eq.s32.totalorder %v227_v30, 0  ;;  %vm269_vm2 = vcmp.eq.s32.totalorder %v227_v30, 1  ;;  %vm270_vm3 = vcmp.eq.s32.totalorder %v227_v30, 2  ;;  %s326_s18 = scalar_lea.hbm %s870_s2, %s454_s21  ;;  %s222_s20 = scalar_lea.vmem [#allocation7], %s446_s4 }
  0x2b   : > { %vm271_vm4 = vcmp.eq.s32.totalorder %v227_v30, 3  ;;  %v449_v34 = vsel %vm268_vm1, 1.0, %v690_v33  ;;  %v450_v35 = vsel %vm269_vm2, 1.0, %v690_v33  ;;  %v451_v36 = vsel %vm270_vm3, 1.0, %v690_v33  ;;  %s328_s26 = sshll.u32 %s222_s20, 4  ;;  %s330_s19 = sshll.u32 %s326_s18, 4  ;;  %s329_s26 = int_to_ptr.vmem [resolvable:$true] %s328_s26  ;;  %s331_s19 = int_to_ptr.hbm [resolvable:$true] %s330_s19 }
  0x2c   : > { %v235_v10 = vmax.f32 %v233_v8, %v234_v9  ;;  %v452_v41 = vsel %vm271_vm4, 1.0, %v690_v33  ;;  %vm300_vm5 = vcmp.ge.s32.totalorder %v227_v30, 0  ;;  %v309_v8 = vlaneseq  ;;  %s315_s12 = scalar_lea.sflag [#allocation4], %s792_s3  ;;  %s614_s27 = sshra.s32 %s331_s19, 4  ;;  %s615_s27 = int_to_ptr.hbm [resolvable:$true] %s614_s27 }
  0x2d   : > { %s616_s28 = scalar_lea.hbm %s615_s27, 8  ;;  %s620_s4 = scalar_lea.hbm %s870_s2, 16 }
  0x2e   : > { %v236_v11 = vsub.f32 %v223_v0, %v235_v10  ;;  %v237_v12 = vsub.f32 %v224_v1, %v235_v10  ;;  %v238_v13 = vsub.f32 %v225_v2, %v235_v10  ;;  %v239_v14 = vsub.f32 %v226_v3, %v235_v10  ;;  %p617_p4 = scmp.ne.s32.totalorder %s615_s27, %s616_s28  ;;  %p621_p7 = scmp.lt.s32.totalorder %s615_s27, %s870_s2 }
  0x2f   : > { %p622_p8 = scmp.lt.s32.totalorder %s620_s4, %s616_s28 }
  0x30   : > { %v240_v15 = vmul.f32 1.442695, %v236_v11  ;;  %v242_v16 = vmul.f32 1.442695, %v237_v12  ;;  %v244_v17 = vmul.f32 1.442695, %v238_v13  ;;  %p618_p5 = pnand %p617_p4, %p757_p9 }
  0x31   : > { %v246_v18 = vmul.f32 1.442695, %v239_v14  ;;  %p623_p10 = por %p622_p8, %p621_p7 }
  0x32   : > { %528 = vpow2.f32 %v240_v15  ;;  %p619_p6 = pneg %p618_p5 }
  0x33   : > { %530 = vpow2.f32 %v242_v16 }
  0x34   : > { %532 = vpow2.f32 %v244_v17  ;;  %p624_p13 = pnand %p623_p10, %p619_p6 }
  0x35   : > { %534 = vpow2.f32 %v246_v18 }
  0x38   : > { %v529_v19 = vpop.eup %528 }
  0x39   : > { %v531_v20 = vpop.eup %530  ;;  %v248_v21 = vsel %vm228_vm0, %v529_v19, 0.0 }
  0x3a   : > { %v533_v22 = vpop.eup %532  ;;  %v249_v23 = vsel %vm228_vm0, %v531_v20, 0.0 }
  0x3b   : > { %v535_v24 = vpop.eup %534  ;;  %v250_v25 = vadd.f32 %v249_v23, %v248_v21  ;;  %v251_v26 = vsel %vm228_vm0, %v533_v22, 0.0 }
  0x3c   : > { %v253_v27 = vsel %vm228_vm0, %v535_v24, 0.0 }
  0x3d   : > { %v252_v28 = vadd.f32 %v251_v26, %v250_v25 }
  0x3f   : > { %v254_v29 = vadd.f32 %v253_v27, %v252_v28 }
  0x41   : > { %536 = vlog2.f32 %v254_v29 }
  0x47   : > { %v537_v31 = vpop.eup %536 }
  0x48   : > { %v256_v32 = vmul.f32 0.6931472, %v537_v31 }
  0x4a   : > { %v257_v37 = vsub.f32 %v236_v11, %v256_v32  ;;  %v258_v38 = vsub.f32 %v237_v12, %v256_v32  ;;  %v259_v39 = vsub.f32 %v238_v13, %v256_v32  ;;  %v260_v40 = vsub.f32 %v239_v14, %v256_v32 }
  0x4b   : > { %v310_v11 = vshrl.u32 %v309_v8, 7 }
  0x4c   : > { %v280_v42 = vmul.f32 %v449_v34, %v257_v37  ;;  %v281_v43 = vmul.f32 %v450_v35, %v258_v38  ;;  %v282_v44 = vmul.f32 %v451_v36, %v259_v39  ;;  %v261_v45 = vsel %vm228_vm0, %v257_v37, 0.0 }
  0x4d   : > { %v262_v46 = vsel %vm228_vm0, %v258_v38, 0.0  ;;  %v283_v47 = vmul.f32 %v452_v41, %v260_v40  ;;  %v264_v54 = vsel %vm228_vm0, %v259_v39, 0.0  ;;  %v266_v58 = vsel %vm228_vm0, %v260_v40, 0.0 }
  0x4e   : > { %v284_v48 = vsel %vm228_vm0, %v280_v42, 0.0  ;;  %v285_v49 = vsel %vm228_vm0, %v281_v43, 0.0  ;;  %v287_v50 = vsel %vm228_vm0, %v282_v44, 0.0  ;;  %v263_v52 = vadd.f32 %v262_v46, %v261_v45 }
  0x4f   : > { %v286_v51 = vadd.f32 %v285_v49, %v284_v48  ;;  %v289_v53 = vsel %vm228_vm0, %v283_v47, 0.0  ;;  %vm311_vm6 = vcmp.eq.s32.totalorder %v310_v11, 0 }
  0x50   : > { %v265_v57 = vadd.f32 %v264_v54, %v263_v52 }
  0x51   : > { %v288_v55 = vadd.f32 %v287_v50, %v286_v51 }
  0x52   : > { %v267_v60 = vadd.f32 %v266_v58, %v265_v57 }
  0x53   : > { %v290_v56 = vadd.f32 %v289_v53, %v288_v55 }
  0x55   : > { %v291_v59 = vmul.f32 1.442695, %v290_v56  ;;  %v294_v61 = vsub.f32 %v267_v60, %v290_v56 }
  0x57   : > { %538 = vpow2.f32 %v291_v59  ;;  %v295_v0 = vmul.f32 0.033333335, %v294_v61 }
  0x5d   : > { %v539_v62 = vpop.eup %538 }
  0x5e   : > { %v293_v63 = vsub.f32 1.0, %v539_v62 }
  0x60   : > { %v296_v1 = vmul.f32 0.9, %v293_v63 }
  0x62   : > { %v297_v2 = vmul.f32 %v296_v1, %v290_v56 }
  0x64   : > { %v298_v3 = vadd.f32 %v297_v2, %v295_v0 }
  0x66   : > { %v299_v4 = vsub.f32 0.0, %v298_v3 }
  0x68   : > { %v301_v5 = vsel %vm300_vm5, %v299_v4, 0.0 }
  0x69   : > { %v302_v6 = vsel %vm228_vm0, %v301_v5, 0.0 }
  0x6a   : > { %v303_v7 = vrot.slane %v302_v6, 4 }
  0x6c   : > { %v304_v9 = vadd.f32 %v303_v7, %v302_v6 }
  0x6e   : > { %v305_v10 = vrot.slane %v304_v9, 2 }
  0x70   : > { %v306_v12 = vadd.f32 %v305_v10, %v304_v9 }
  0x72   : > { %v307_v13 = vrot.slane %v306_v12, 1 }
  0x74   : > { %v308_v14 = vadd.f32 %v307_v13, %v306_v12 }
  0x76   : > { %v312_v15 = vsel %vm311_vm6, %v308_v14, 0.0 }
  0x77   : > { %313 = vst [vmem:[%s222_s20] sm:$0xff] %v312_v15 }
  0x78   : > { %627 = shalt.err (!%p624_p13)
}
  0x79   : > { %462 = dma.vmem_to_hbm [thread:$0]  (%p757_p9), %s329_s26, 128, %s331_s19, %s315_s12  }
  0x7a PF: > { %s342_s3 = sand.u32 1, %s666_s9   ;;  %p472_p0 = pnand %p439_p12, %p764_p11 }
  0x7b   : > { %s343_s25 = scalar_lea.sflag [#allocation4], %s342_s3 }
  0x7c   : > { %p473_p1 = pneg %p472_p0 }
  0x7e   : > { %661 = dma.done.wait (%p473_p1), %s343_s25, 128  }
  0x7f   : > { %663 = vsyncadd (%p473_p1), %s343_s25, 4294967168  ;;  %s21_s14 = sadd.s32 1, %s686_s14   ;;  %s876_s9 = smov %s670_s10 }
  0x80   : > { %p18_p2 = scmp.ge.s32.totalorder %s21_s14, 4   ;;  %s877_s10 = smov %s674_s11 }
  0x81   : > { %s878_s11 = smov %s762_s23  ;;  %s879_s12 = smov %s682_s13 }
  0x82   : > { %s880_s13 = smov %s882_s17  ;;  %20 = sbr.rel (!%p18_p2) target bundleno = 8 (0x8), region = 86 }
  0x87   :  { %349 = vsyncpa [#allocation3], 1 }
  0x88   :  { %351 = vsyncpa [#allocation3 + $0x1], 1 }
  0x89   :  { %352 = vsyncpa [#allocation6], 1 }
  0x8a   :  { %354 = vsyncpa [#allocation6 + $0x1], 1 }
  0x8b   :  { %355 = vsyncpa [#allocation4], 1 }
  0x8c   :  { %357 = vsyncpa [#allocation4 + $0x1], 1 }

</bundles_post_ra>
